<compile_context>
chip_gen: v7x
topology: tpu7x:2x2x1
jax: 0.10.0
libtpu: 0.0.40
codegen_flags: <defaults>
</compile_context>

<pallas_src>
import jax
import jax.numpy as jnp
from jax.experimental import pallas as pl
from jax.experimental.pallas import tpu as pltpu


def _round_up(x, m):
    return (x + m - 1) // m * m


def _residual_mlp_kernel(x_ref, w1_ref, b1_ref, w2_ref, b2_ref, o_ref):
    x = x_ref[...]                                     # (TB, Dp) f32 (residual)
    xc = x.astype(w1_ref.dtype)                        # MXU input dtype
    # Linear1 + folded BN1 + ReLU
    h = jnp.dot(xc, w1_ref[...], preferred_element_type=jnp.float32)
    h = jnp.maximum(h + b1_ref[...], 0.0)
    # Dropout(p=0.15) is identity in eval mode.
    # Linear2 + folded BN2
    y = jnp.dot(h.astype(w2_ref.dtype), w2_ref[...],
                preferred_element_type=jnp.float32)
    y = y + b2_ref[...]
    # Residual add (f32) + ReLU
    o_ref[...] = jnp.maximum(x + y, 0.0)


def residual_mlp_block(x, params, *, eps=1e-5, compute_dtype=jnp.float32,
                       max_rows_per_tile=512):
    """x: (B, dim) float32. params: dict of torch-convention weights."""
    B, D = x.shape
    f32 = jnp.float32

    # ---- JAX glue: fold BN (eval) into the Linear weights/bias ----
    #   (x @ W^T + b) * s + t  ==  x @ (W^T * s) + (b*s + t)
    def fold(w, b, gamma, beta, mean, var):
        s = gamma / jnp.sqrt(var + eps)
        t = beta - mean * s
        w_folded = (w.T * s[None, :]).astype(compute_dtype)   # (in, out)
        b_folded = (b * s + t).astype(f32)                     # kept f32
        return w_folded, b_folded

    w1, b1 = fold(params["w1"], params["b1"], params["bn1_gamma"],
                  params["bn1_beta"], params["bn1_mean"], params["bn1_var"])
    w2, b2 = fold(params["w2"], params["b2"], params["bn2_gamma"],
                  params["bn2_beta"], params["bn2_mean"], params["bn2_var"])

    # ---- lane-dense padding of the feature dim ----
    Dp = _round_up(D, 128)
    wb = jnp.dtype(compute_dtype).itemsize

    # ---- batch tile selection (multiple of 8, fits scoped VMEM) ----
    B8 = _round_up(B, 8)
    weight_bytes = 2 * 2 * Dp * Dp * wb          # 2 weight panels x 2 buffers
    per_row = (2 * 2 + 2) * Dp * 4               # x/out double-buffered + h/y temps
    budget = 24 * 1024 * 1024
    avail = max(budget - weight_bytes, per_row * 8)
    tb = min(max_rows_per_tile, B8, avail // per_row)
    tb = max(8, (tb // 8) * 8)
    Bp = _round_up(B8, tb)

    # ---- zero-pad operands (padded lanes/rows compute harmlessly, sliced off) ----
    if Dp != D:
        w1 = jnp.zeros((Dp, Dp), compute_dtype).at[:D, :D].set(w1)
        w2 = jnp.zeros((Dp, Dp), compute_dtype).at[:D, :D].set(w2)
        b1 = jnp.zeros((Dp,), f32).at[:D].set(b1)
        b2 = jnp.zeros((Dp,), f32).at[:D].set(b2)
    b1 = b1.reshape(1, Dp)
    b2 = b2.reshape(1, Dp)

    xp = x.astype(f32)
    if (Bp, Dp) != (B, D):
        xp = jnp.zeros((Bp, Dp), f32).at[:B, :D].set(xp)

    grid = (Bp // tb,)

    # Only raise the scoped-VMEM limit when the footprint actually needs it.
    needed = (weight_bytes + 2 * 2 * tb * Dp * 4     # x/out double-buffered
              + 2 * tb * Dp * 4                      # h / y temporaries
              + 4 * 2 * Dp * 4)                      # biases (double-buffered)
    cp_kwargs = dict(dimension_semantics=("parallel",))
    est = needed + (4 << 20)
    if est > (32 << 20):
        cp_kwargs["vmem_limit_bytes"] = int(min(est, 128 << 20))

    # Advisory cost hint for XLA's scheduler (two Dp x Dp matmuls per row).
    cost = pl.CostEstimate(
        flops=2 * 2 * Bp * Dp * Dp,
        transcendentals=0,
        bytes_accessed=(2 * Bp * Dp * 4               # x in + out
                        + 2 * Dp * Dp * wb            # weight panels (read once)
                        + 2 * Dp * 4),                # biases
    )

    out = pl.pallas_call(
        _residual_mlp_kernel,
        out_shape=jax.ShapeDtypeStruct((Bp, Dp), f32),
        grid=grid,
        in_specs=[
            pl.BlockSpec((tb, Dp), lambda i: (i, 0)),   # x  (pipelined)
            pl.BlockSpec((Dp, Dp), lambda i: (0, 0)),   # w1 (VMEM-resident)
            pl.BlockSpec((1, Dp), lambda i: (0, 0)),    # b1 (folded BN1)
            pl.BlockSpec((Dp, Dp), lambda i: (0, 0)),   # w2 (VMEM-resident)
            pl.BlockSpec((1, Dp), lambda i: (0, 0)),    # b2 (folded BN2)
        ],
        out_specs=pl.BlockSpec((tb, Dp), lambda i: (i, 0)),
        compiler_params=pltpu.CompilerParams(**cp_kwargs),
        cost_estimate=cost,
    )(xp, w1, b1, w2, b2)

    if (Bp, Dp) != (B, D):
        out = out[:B, :D]
    return out
    # TODO(synk): for D >~ 2048 on v7x (64 MiB VMEM), tile the weight K/N dims
    # instead of keeping both full (Dp, Dp) panels resident.


def _reference(x, params, eps=1e-5):
    """Pure-JAX reference mirroring the PyTorch eval-mode forward."""
    h = x @ params["w1"].T + params["b1"]
    h = (h - params["bn1_mean"]) / jnp.sqrt(params["bn1_var"] + eps)
    h = h * params["bn1_gamma"] + params["bn1_beta"]
    h = jnp.maximum(h, 0.0)
    y = h @ params["w2"].T + params["b2"]
    y = (y - params["bn2_mean"]) / jnp.sqrt(params["bn2_var"] + eps)
    y = y * params["bn2_gamma"] + params["bn2_beta"]
    return jnp.maximum(x + y, 0.0)


if __name__ == "__main__":
    B, D = 48, 32
    key = jax.random.PRNGKey(0)
    ks = jax.random.split(key, 8)

    bound = 1.0 / jnp.sqrt(D)  # PyTorch nn.Linear default init range
    params = {
        "w1": jax.random.uniform(ks[0], (D, D), jnp.float32, -bound, bound),
        "b1": jax.random.uniform(ks[1], (D,), jnp.float32, -bound, bound),
        "w2": jax.random.uniform(ks[2], (D, D), jnp.float32, -bound, bound),
        "b2": jax.random.uniform(ks[3], (D,), jnp.float32, -bound, bound),
        # BatchNorm1d params + running stats (deterministic, non-trivial)
        "bn1_gamma": 1.0 + 0.1 * jax.random.normal(ks[4], (D,), jnp.float32),
        "bn1_beta": 0.05 * jax.random.normal(ks[5], (D,), jnp.float32),
        "bn1_mean": 0.1 * jax.random.normal(ks[6], (D,), jnp.float32),
        "bn1_var": 0.5 + jax.random.uniform(ks[7], (D,), jnp.float32),
        "bn2_gamma": 1.0 - 0.05 * jax.random.normal(ks[4], (D,), jnp.float32),
        "bn2_beta": 0.02 * jax.random.normal(ks[5], (D,), jnp.float32),
        "bn2_mean": 0.05 * jax.random.normal(ks[6], (D,), jnp.float32),
        "bn2_var": 0.75 + 0.5 * jax.random.uniform(ks[7], (D,), jnp.float32),
    }

    x = jax.random.normal(jax.random.PRNGKey(42), (B, D), jnp.float32)
    ref = _reference(x, params)

    # f32 MXU path (exercises a 3-step batch grid: 48 rows / 16-row tiles).
    out = residual_mlp_block(x, params, max_rows_per_tile=16)
    out = jax.block_until_ready(out)
    assert out.shape == (B, D)
    assert jnp.allclose(out, ref, atol=1e-4, rtol=1e-4), "f32 mismatch vs reference"

    # bf16 MXU fast path (v6e/v7x): f32 accumulation, looser tolerance.
    out_bf16 = residual_mlp_block(x, params, compute_dtype=jnp.bfloat16,
                                  max_rows_per_tile=16)
    out_bf16 = jax.block_until_ready(out_bf16)
    assert jnp.allclose(out_bf16, ref, atol=5e-2, rtol=5e-2), "bf16 mismatch vs reference"

    print("KERNEL_OK")
</pallas_src>

<mosaic_0001>
module attributes {stable_mosaic.version = 11 : i64} {
  func.func @_residual_mlp_kernel(%arg0: i32, %arg1: memref<16x128xf32, #tpu.memory_space<vmem>>, %arg2: memref<128x128xf32, #tpu.memory_space<vmem>>, %arg3: memref<1x128xf32, #tpu.memory_space<vmem>>, %arg4: memref<128x128xf32, #tpu.memory_space<vmem>>, %arg5: memref<1x128xf32, #tpu.memory_space<vmem>>, %arg6: memref<16x128xf32, #tpu.memory_space<vmem>>) attributes {dimension_semantics = [#tpu.dimension_semantics<parallel>], iteration_bounds = array<i64: 3>, scalar_prefetch = 0 : i64, scratch_operands = 0 : i64, tpu.core_type = #tpu.core_type<tc>, window_params = [{transform_indices = @transform_0, window_bounds = array<i64: 16, 128>}, {pipeline_mode = #tpu.pipeline_mode<synchronous>, transform_indices = @transform_1, window_bounds = array<i64: 128, 128>}, {pipeline_mode = #tpu.pipeline_mode<synchronous>, transform_indices = @transform_2, window_bounds = array<i64: 1, 128>}, {pipeline_mode = #tpu.pipeline_mode<synchronous>, transform_indices = @transform_3, window_bounds = array<i64: 128, 128>}, {pipeline_mode = #tpu.pipeline_mode<synchronous>, transform_indices = @transform_4, window_bounds = array<i64: 1, 128>}, {transform_indices = @transform_5, window_bounds = array<i64: 16, 128>}]} {
    %c0 = arith.constant 0 : index
    %c0_0 = arith.constant 0 : index
    %0 = vector.load %arg1[%c0, %c0_0] : memref<16x128xf32, #tpu.memory_space<vmem>>, vector<16x128xf32>
    %c0_1 = arith.constant 0 : index
    %c0_2 = arith.constant 0 : index
    %1 = vector.load %arg2[%c0_1, %c0_2] : memref<128x128xf32, #tpu.memory_space<vmem>>, vector<128x128xf32>
    %cst = arith.constant dense<0.000000e+00> : vector<16x128xf32>
    %2 = tpu.matmul %0, %1, %cst {dimension_numbers = #tpu.dot_dimension_numbers<[1], [0], [0], [1], [0, 0, 1, 1], [], []>} : vector<16x128xf32>, vector<128x128xf32>, vector<16x128xf32> -> vector<16x128xf32>
    %c0_3 = arith.constant 0 : index
    %c0_4 = arith.constant 0 : index
    %3 = vector.load %arg3[%c0_3, %c0_4] : memref<1x128xf32, #tpu.memory_space<vmem>>, vector<1x128xf32>
    %4 = vector.broadcast %3 : vector<1x128xf32> to vector<16x128xf32>
    %5 = arith.addf %2, %4 : vector<16x128xf32>
    %cst_5 = arith.constant 0.000000e+00 : f32
    %6 = vector.broadcast %cst_5 : f32 to vector<16x128xf32>
    %7 = arith.maximumf %5, %6 : vector<16x128xf32>
    %c0_6 = arith.constant 0 : index
    %c0_7 = arith.constant 0 : index
    %8 = vector.load %arg4[%c0_6, %c0_7] : memref<128x128xf32, #tpu.memory_space<vmem>>, vector<128x128xf32>
    %cst_8 = arith.constant dense<0.000000e+00> : vector<16x128xf32>
    %9 = tpu.matmul %7, %8, %cst_8 {dimension_numbers = #tpu.dot_dimension_numbers<[1], [0], [0], [1], [0, 0, 1, 1], [], []>} : vector<16x128xf32>, vector<128x128xf32>, vector<16x128xf32> -> vector<16x128xf32>
    %c0_9 = arith.constant 0 : index
    %c0_10 = arith.constant 0 : index
    %10 = vector.load %arg5[%c0_9, %c0_10] : memref<1x128xf32, #tpu.memory_space<vmem>>, vector<1x128xf32>
    %11 = vector.broadcast %10 : vector<1x128xf32> to vector<16x128xf32>
    %12 = arith.addf %9, %11 : vector<16x128xf32>
    %13 = arith.addf %0, %12 : vector<16x128xf32>
    %cst_11 = arith.constant 0.000000e+00 : f32
    %14 = vector.broadcast %cst_11 : f32 to vector<16x128xf32>
    %15 = arith.maximumf %13, %14 : vector<16x128xf32>
    %c0_12 = arith.constant 0 : index
    %c0_13 = arith.constant 0 : index
    %16 = vector.load %arg6[%c0_12, %c0_13] : memref<16x128xf32, #tpu.memory_space<vmem>>, vector<16x128xf32>
    tpu.vector_store %arg6[%c0_12, %c0_13], %15 {strides = array<i32>} : memref<16x128xf32, #tpu.memory_space<vmem>>, vector<16x128xf32>,
    return
  }
  func.func @transform_0(%arg0: i32) -> (i32, i32) {
    %c0_i32 = arith.constant 0 : i32
    %c0_i32_0 = arith.constant 0 : i32
    return %arg0, %c0_i32 : i32, i32
  }
  func.func @transform_1(%arg0: i32) -> (i32, i32) {
    %c0_i32 = arith.constant 0 : i32
    %c0_i32_0 = arith.constant 0 : i32
    %c0_i32_1 = arith.constant 0 : i32
    return %c0_i32, %c0_i32_0 : i32, i32
  }
  func.func @transform_2(%arg0: i32) -> (i32, i32) {
    %c0_i32 = arith.constant 0 : i32
    %c0_i32_0 = arith.constant 0 : i32
    %c0_i32_1 = arith.constant 0 : i32
    return %c0_i32, %c0_i32_0 : i32, i32
  }
  func.func @transform_3(%arg0: i32) -> (i32, i32) {
    %c0_i32 = arith.constant 0 : i32
    %c0_i32_0 = arith.constant 0 : i32
    %c0_i32_1 = arith.constant 0 : i32
    return %c0_i32, %c0_i32_0 : i32, i32
  }
  func.func @transform_4(%arg0: i32) -> (i32, i32) {
    %c0_i32 = arith.constant 0 : i32
    %c0_i32_0 = arith.constant 0 : i32
    %c0_i32_1 = arith.constant 0 : i32
    return %c0_i32, %c0_i32_0 : i32, i32
  }
  func.func @transform_5(%arg0: i32) -> (i32, i32) {
    %c0_i32 = arith.constant 0 : i32
    %c0_i32_0 = arith.constant 0 : i32
    return %arg0, %c0_i32 : i32, i32
  }
}

</mosaic_0001>

<bundles_post_ra>
// kernel: tpu_custom_call.1
= control target key start
LH: loop header
LB: loop body
LE: loop exit
PB: predicated region body
PF: predicated region fallthrough
CT: control target
= control target key end

     0   :  { %10 = vsyncpa [#allocation3], 0  ;;  %s1297_s0 = inlined_call_operand.hbm [shape: f32[48,128], index: 0, kind: input, shape index: {}]   ;;  %s1298_s1 = inlined_call_operand.hbm [shape: f32[128,128], index: 1, kind: input, shape index: {}]   ;;  %s1299_s2 = inlined_call_operand.vmem [shape: f32[1,128], index: 2, kind: input, shape index: {}]   ;;  %s1300_s3 = inlined_call_operand.hbm [shape: f32[128,128], index: 3, kind: input, shape index: {}]   ;;  %s1301_s4 = inlined_call_operand.vmem [shape: f32[1,128], index: 4, kind: input, shape index: {}]   ;;  %s1302_s5 = inlined_call_operand.hbm [shape: f32[48,128], index: 5, kind: output, shape index: {}]  }
   0x1   :  { %12 = vsyncpa [#allocation3 + $0x1], 0 }
   0x2   :  { %13 = vsyncpa [#allocation6], 0 }
   0x3   :  { %14 = vsyncpa [#allocation4], 0 }
   0x4   :  { %16 = vsyncpa [#allocation4 + $0x1], 0  ;;  %s1045_s18 = smov 0   ;;  %s1047_s19 = smov 0  }
   0x5   :  { %s1049_s20 = smov 0   ;;  %s1051_s21 = smov 0  }
   0x6 LB: > { %s1066_s22 = sadd.s32 4294967295, %s1005_s21   ;;  %s586_s23 = sadd.s32 4294967294, %s1005_s21   ;;  %s1005_s21 = sphi %s1051_s21, %s1321_s21   ;;  %s1001_s20 = sphi %s1049_s20, %s1320_s20   ;;  %s997_s19 = sphi %s1047_s19, %s1319_s19   ;;  %s993_s18 = sphi %s1045_s18, %s1318_s18  }
   0x7   : > { %p42_p0 = scmp.ne.s32.totalorder %s997_s19, %s993_s18  ;;  %p1303_p1 = scmp.eq.s32.totalorder %s1066_s22, 0 }
   0x8   : > { %p156_p3 = scmp.eq.s32.totalorder %s586_s23, 2  ;;  %p587_p5 = scmp.ge.s32.totalorder %s1005_s21, 1 }
   0x9   : > { %p1075_p4 = por %p1303_p1, %p42_p0  ;;  %p163_p7 = scmp.lt.s32.totalorder %s1005_s21, 4 }
   0xa   : > { %p1080_p6 = por %p156_p3, %p42_p0  ;;  %s1007_s27 = smov [#allocation5]  }
   0xb   : > { %s1306_s24 = scalar_select %p1075_p4, 1, 0 }
   0xc   : > { %s1307_s25 = scalar_select %p1080_p6, 1, 0 }
   0xd   : > { %p1085_p8 = pnand %p587_p5, %p163_p7  ;;  %s175_s28 = sshll.u32 %s1007_s27, 4  ;;  %s176_s28 = int_to_ptr.vmem [resolvable:$true] %s175_s28 }
   0xe   : > { %s1008_s30 = smov [#allocation7]   ;;  %s849_s9 = scalar_lea.hbm %s1298_s1, 2048 }
   0xf   : > { %s1308_s26 = scalar_select %p1085_p8, 1, 0 }
  0x10   : > { %p790_p9 = pneg %p1085_p8  ;;  %s191_s6 = sshll.u32 %s1008_s30, 4  ;;  %s1097_s6 = int_to_ptr.vmem [resolvable:$true] %s191_s6 }
  0x11   : > { %p850_p11 = scmp.ne.s32.totalorder %s1298_s1, %s849_s9  ;;  %p856_p3 = scmp.lt.u32.totalorder %s849_s9, %s1298_s1 }
  0x12   : > { %p1093_p10 = pnand %p790_p9, %p1303_p1 }
  0x14   : > { %p851_p12 = pneg %p1093_p10 }
  0x16   : > { %p852_p13 = pnand %p851_p12, %p850_p11 }
  0x18   : > { %p853_p0 = pneg %p852_p13 }
  0x1a   : > { %p858_p5 = pnand %p856_p3, %p853_p0 }
  0x1c   : > { %861 = shalt.err (!%p858_p5)
}
  0x1d   : > { %s862_s14 = scalar_lea.vmem %s176_s28, 2048  ;;  %p870_p2 = scmp.lt.s32.totalorder %s176_s28, %s176_s28 }
  0x1e   : > { %p863_p7 = scmp.ne.s32.totalorder %s176_s28, %s862_s14  ;;  %p871_p6 = scmp.lt.s32.totalorder %s862_s14, %s862_s14 }
  0x20   : > { %p865_p9 = pnand %p863_p7, %p851_p12  ;;  %p872_p4 = por %p871_p6, %p870_p2 }
  0x22   : > { %p866_p1 = pneg %p865_p9 }
  0x24   : > { %p873_p8 = pnand %p872_p4, %p866_p1 }
  0x26   : > { %876 = shalt.err (!%p873_p8)
}
  0x27   : > { %s1009_s15 = smov 128   ;;  %s1010_s16 = smov 8  }
  0x28   : > { %793 = dma.hbm_to_vmem [thread:$0]  (!%p1093_p10), %s1298_s1, 2048, %s176_s28, [#allocation6], %s1009_s15, %s1009_s15, %s1010_s16  }
  0x29   : > { %s877_s7 = scalar_lea.hbm %s1300_s3, 2048 }
  0x2a   : > { %p878_p1 = scmp.ne.s32.totalorder %s1300_s3, %s877_s7  ;;  %p884_p6 = scmp.lt.u32.totalorder %s877_s7, %s1300_s3 }
  0x2c   : > { %p880_p2 = pnand %p878_p1, %p851_p12 }
  0x2e   : > { %p881_p4 = pneg %p880_p2 }
  0x30   : > { %p886_p8 = pnand %p884_p6, %p881_p4 }
  0x32   : > { %889 = shalt.err (!%p886_p8)
}
  0x33   : > { %s890_s28 = scalar_lea.vmem %s1097_s6, 2048  ;;  %p898_p3 = scmp.lt.s32.totalorder %s1097_s6, %s1097_s6 }
  0x34   : > { %p891_p11 = scmp.ne.s32.totalorder %s1097_s6, %s890_s28  ;;  %p899_p5 = scmp.lt.s32.totalorder %s890_s28, %s890_s28 }
  0x36   : > { %p893_p13 = pnand %p891_p11, %p851_p12  ;;  %p900_p7 = por %p899_p5, %p898_p3 }
  0x38   : > { %p894_p0 = pneg %p893_p13 }
  0x3a   : > { %p901_p9 = pnand %p900_p7, %p894_p0 }
  0x3c   : > { %904 = shalt.err (!%p901_p9)
}
  0x3d   : > { %796 = dma.hbm_to_vmem [thread:$0]  (!%p1093_p10), %s1300_s3, 2048, %s1097_s6, [#allocation6], %s1009_s15, %s1009_s15, %s1010_s16  }
  0x3e   : > { %s1153_s29 = sadd.s32 1, %s1005_s21   ;;  %s29_s14 = sadd.s32 1, %s1001_s20 }
  0x3f   : > { %s26_s17 = ssub.s32 %s1005_s21, %s1153_s29  ;;  %p36_p12 = scmp.ne.s32.totalorder %s1001_s20, %s997_s19 }
  0x40   : > { %p27_p1 = scmp.eq.s32.totalorder %s26_s17, 0  ;;  %p37_p2 = scmp.eq.s32.totalorder %s1005_s21, 0 }
  0x41   : > { %p1310_p4 = scmp.eq.s32.totalorder %s1066_s22, 2  ;;  %p807_p8 = scmp.lt.s32.totalorder %s1005_s21, 3 }
  0x42   : > { %s1169_s27 = scalar_select %p27_p1, %s1001_s20, %s29_s14  }
  0x43   : > { %p1163_p6 = por %p1310_p4, %p36_p12  ;;  %p38_p11 = por %p37_p2, %p36_p12 }
  0x44   : > { %s208_s30 = sand.u32 1, %s1001_s20   ;;  %s606_s6 = sshll.u32 %s1005_s21, 8 }
  0x45   : > { %s591_s7 = sshll.u32 %s208_s30, 4  ;;  %s1176_s10 = scalar_lea.hbm %s1297_s0, %s606_s6 }
  0x46   : > { %s212_s11 = scalar_lea.vmem [#allocation2], %s591_s7  ;;  %p1180_p10 = pnand %p807_p8, %p38_p11 }
  0x47   : > { %s219_s28 = sshll.u32 %s212_s11, 4  ;;  %s1184_s13 = scalar_lea.sflag [#allocation3], %s208_s30  ;;  %s1178_s28 = int_to_ptr.vmem [resolvable:$true] %s219_s28 }
  0x48   : > { %s905_s14 = scalar_lea.hbm %s1176_s10, 256  ;;  %p907_p0 = pneg %p1180_p10 }
  0x49   : > { %p906_p13 = scmp.ne.s32.totalorder %s1176_s10, %s905_s14  ;;  %s910_s6 = scalar_lea.hbm %s1297_s0, 768 }
  0x4a   : > { %p911_p7 = scmp.lt.u32.totalorder %s1176_s10, %s1297_s0  ;;  %p912_p9 = scmp.lt.u32.totalorder %s910_s6, %s905_s14 }
  0x4b   : > { %p908_p3 = pnand %p907_p0, %p906_p13  ;;  %p914_p1 = scmp.lt.u32.totalorder %s905_s14, %s1176_s10 }
  0x4c   : > { %p913_p12 = por %p912_p9, %p911_p7 }
  0x4d   : > { %p909_p5 = pneg %p908_p3 }
  0x4e   : > { %p915_p2 = por %p914_p1, %p913_p12 }
  0x50   : > { %p916_p4 = pnand %p915_p2, %p909_p5 }
  0x52   : > { %919 = shalt.err (!%p916_p4)
}
  0x53   : > { %s920_s30 = scalar_lea.vmem %s1178_s28, 256  ;;  %s1011_s11 = smov [#allocation2]  }
  0x54   : > { %p921_p8 = scmp.ne.s32.totalorder %s1178_s28, %s920_s30  ;;  %s925_s17 = sshll.u32 %s1011_s11, 4  ;;  %s926_s17 = int_to_ptr.vmem [resolvable:$false] %s925_s17 }
  0x55   : > { %s927_s7 = scalar_lea.vmem %s926_s17, 512  ;;  %p928_p3 = scmp.lt.s32.totalorder %s1178_s28, %s926_s17 }
  0x56   : > { %p923_p11 = pnand %p921_p8, %p907_p0  ;;  %p929_p7 = scmp.lt.s32.totalorder %s927_s7, %s920_s30 }
  0x58   : > { %p924_p13 = pneg %p923_p11  ;;  %p930_p9 = por %p929_p7, %p928_p3 }
  0x5a   : > { %p931_p12 = pnand %p930_p9, %p924_p13 }
  0x5c   : > { %934 = shalt.err (!%p931_p12)
}
  0x5d   : > { %800 = dma.hbm_to_vmem [thread:$0]  (!%p1180_p10), %s1176_s10, 256, %s1178_s28, %s1184_s13, %s1009_s15, %s1009_s15, %s1010_s16  }
  0x5e   : > { %p1313_p0 = scmp.ne.s32.totalorder %s1308_s26, 0 }
  0x5f   : > { %s1218_s14 = sand.u32 (!%p1313_p0), 1, %s997_s19   ;;  %p1314_p5 = scmp.ne.s32.totalorder (!%p1313_p0), %s1306_s24, 0 }
  0x60   : > { %231 = sbr.rel (%p1313_p0) target bundleno = 594 (0x252), region = 40  ;;  %s595_s6 = sshll.u32 (!%p1313_p0), %s1218_s14, 4 }
  0x61   : > { %s234_s8 = scalar_lea.sflag (!%p1313_p0), [#allocation3], %s1218_s14  ;;  %s1224_s12 = scalar_lea.vmem (!%p1313_p0), [#allocation2], %s595_s6 }
  0x67   : > { %980 = dma.done.wait (%p1314_p5), %s234_s8, 256  }
  0x68   : > { %982 = vsyncadd (%p1314_p5), %s234_s8, 4294967040  ;;  %p1315_p10 = scmp.eq.s32.totalorder %s1066_s22, 0 }
  0x6a   : > { %984 = dma.done.wait (%p1315_p10), [#allocation6], 4096   ;;  %p1316_p1 = pmov %p1315_p10 }
  0x6b   : > { %v276_v0 = vld [vmem:[#allocation5] sm:$0xff]  ;;  %v277_v1 = vld [vmem:[#allocation5 + $0x8] sm:$0xff]  ;;  %v278_v2 = vld [vmem:[#allocation5 + $0x10] sm:$0xff]  ;;  %s271_s10 = scalar_lea.vmem [#allocation8], %s595_s6  ;;  %s607_s13 = sshll.u32 %s1066_s22, 8 }
  0x6c   : > { %986 = vsyncadd (%p1316_p1), [#allocation6], 4294963200  ;;  %v714_v3 = vpack.c.bf16 %v277_v1, %v276_v0  ;;  %v279_v4 = vld [vmem:[#allocation5 + $0x18] sm:$0xff]  ;;  %v280_v6 = vld [vmem:[#allocation5 + $0x20] sm:$0xff]  ;;  %s494_s28 = sshll.u32 %s271_s10, 4  ;;  %s1254_s11 = scalar_lea.hbm %s1302_s5, %s607_s13  ;;  %s1248_s28 = int_to_ptr.vmem [resolvable:$true] %s494_s28 }
  0x6d   : > { %v718_v5 = vpack.c.bf16 %v279_v4, %v278_v2  ;;  %v281_v7 = vld [vmem:[#allocation5 + $0x28] sm:$0xff]  ;;  %v282_v9 = vld [vmem:[#allocation5 + $0x30] sm:$0xff]  ;;  %v283_v10 = vld [vmem:[#allocation5 + $0x38] sm:$0xff]  ;;  %s481_s17 = scalar_lea.sflag [#allocation4], %s1218_s14  ;;  %s935_s7 = scalar_lea.vmem %s1248_s28, 256 }
  0x6e   : > { %715 = vmatprep.subr.bf16.mxu0 %v714_v3  ;;  %v722_v8 = vpack.c.bf16 %v281_v7, %v280_v6  ;;  %v1235_v11 = vld [vmem:[%s1224_s12] sm:$0xff]  ;;  %v377_v13 = vld [vmem:[#allocation7 + $0x8] sm:$0xff]  ;;  %v379_v16 = vld [vmem:[#allocation7 + $0x18] sm:$0xff]  ;;  %v726_v20 = vpack.c.bf16 %v283_v10, %v282_v9  ;;  %p936_p2 = scmp.ne.s32.totalorder %s1248_s28, %s935_s7  ;;  %s1012_s22 = smov [#allocation8]  }
  0x6f   : > { %717 = vmatpush3.bf16.msra.mxu0 %v714_v3  ;;  %676 = vmatprep.mubr.f32.mxu0 %v1235_v11  ;;  %v376_v12 = vld [vmem:[#allocation7] sm:$0xff]  ;;  %v378_v14 = vld [vmem:[#allocation7 + $0x10] sm:$0xff]  ;;  %v381_v19 = vld [vmem:[#allocation7 + $0x28] sm:$0xff]  ;;  %s939_s6 = sshll.u32 %s1012_s22, 4  ;;  %s940_s6 = int_to_ptr.vmem [resolvable:$false] %s939_s6 }
  0x70   : > { %719 = vmatprep.subr.bf16.mxu0 %v718_v5  ;;  %v746_v15 = vpack.c.bf16 %v377_v13, %v376_v12  ;;  %v750_v17 = vpack.c.bf16 %v379_v16, %v378_v14  ;;  %v380_v18 = vld [vmem:[#allocation7 + $0x20] sm:$0xff]  ;;  %v285_v22 = vld [vmem:[#allocation5 + $0x48] sm:$0xff]  ;;  %v382_v24 = vld [vmem:[#allocation7 + $0x30] sm:$0xff]  ;;  %p937_p4 = pnand %p936_p2, %p1163_p6  ;;  %s941_s8 = scalar_lea.vmem %s940_s6, 512 }
  0x71   : > { %v284_v21 = vld [vmem:[#allocation5 + $0x40] sm:$0xff]  ;;  %v754_v23 = vpack.c.bf16 %v381_v19, %v380_v18  ;;  %v383_v25 = vld [vmem:[#allocation7 + $0x38] sm:$0xff]  ;;  %v286_v27 = vld [vmem:[#allocation5 + $0x50] sm:$0xff]  ;;  %p942_p11 = scmp.lt.s32.totalorder %s1248_s28, %s940_s6  ;;  %p943_p13 = scmp.lt.s32.totalorder %s941_s8, %s935_s7 }
  0x72   : > { %747 = vmatprep.subr.bf16.mxu1 %v746_v15  ;;  %v730_v26 = vpack.c.bf16 %v285_v22, %v284_v21  ;;  %v287_v28 = vld [vmem:[#allocation5 + $0x58] sm:$0xff]  ;;  %v758_v29 = vpack.c.bf16 %v383_v25, %v382_v24  ;;  %v384_v30 = vld [vmem:[#allocation7 + $0x40] sm:$0xff]  ;;  %v385_v31 = vld [vmem:[#allocation7 + $0x48] sm:$0xff]  ;;  %p938_p8 = pneg %p937_p4 }
  0x73   : > { %721 = vmatpush3.bf16.msra.mxu0 %v718_v5  ;;  %749 = vmatpush3.bf16.msra.mxu1 %v746_v15  ;;  %v734_v32 = vpack.c.bf16 %v287_v28, %v286_v27  ;;  %v288_v33 = vld [vmem:[#allocation5 + $0x60] sm:$0xff]  ;;  %v289_v34 = vld [vmem:[#allocation5 + $0x68] sm:$0xff]  ;;  %v762_v35 = vpack.c.bf16 %v385_v31, %v384_v30  ;;  %v386_v36 = vld [vmem:[#allocation7 + $0x50] sm:$0xff]  ;;  %p944_p3 = por %p943_p13, %p942_p11 }
  0x74   : > { %723 = vmatprep.subr.bf16.mxu0 %v722_v8  ;;  %751 = vmatprep.subr.bf16.mxu1 %v750_v17  ;;  %v387_v37 = vld [vmem:[#allocation7 + $0x58] sm:$0xff]  ;;  %v738_v38 = vpack.c.bf16 %v289_v34, %v288_v33  ;;  %v290_v39 = vld [vmem:[#allocation5 + $0x70] sm:$0xff]  ;;  %v388_v42 = vld [vmem:[#allocation7 + $0x60] sm:$0xff] }
  0x75   : > { %v291_v40 = vld [vmem:[#allocation5 + $0x78] sm:$0xff]  ;;  %v766_v41 = vpack.c.bf16 %v387_v37, %v386_v36  ;;  %v389_v43 = vld [vmem:[#allocation7 + $0x68] sm:$0xff]  ;;  %v390_v47 = vld [vmem:[#allocation7 + $0x70] sm:$0xff]  ;;  %p945_p7 = pnand %p944_p3, %p938_p8 }
  0x76   : > { %v742_v44 = vpack.c.bf16 %v291_v40, %v290_v39  ;;  %v770_v45 = vpack.c.bf16 %v389_v43, %v388_v42  ;;  %v275_v46 = vld [vmem:[%s1224_s12 + $0x8] sm:$0xff]  ;;  %v599_v50 = vld [vmem:[%s1299_s2] ss:$0 sm:$0xff] }
  0x77   : > { %725 = vmatpush3.bf16.msra.mxu0 %v722_v8  ;;  %753 = vmatpush3.bf16.msra.mxu1 %v750_v17  ;;  %v391_v48 = vld [vmem:[#allocation7 + $0x78] sm:$0xff]  ;;  %v600_v57 = vld [vmem:[%s1301_s4] ss:$0 sm:$0xff] }
  0x78   : > { %727 = vmatprep.subr.bf16.mxu0 %v726_v20  ;;  %755 = vmatprep.subr.bf16.mxu1 %v754_v23  ;;  %v774_v49 = vpack.c.bf16 %v391_v48, %v390_v47 }
  0x7b   : > { %729 = vmatpush3.bf16.msra.mxu0 %v726_v20  ;;  %757 = vmatpush3.bf16.msra.mxu1 %v754_v23 }
  0x7c   : > { %731 = vmatprep.subr.bf16.mxu0 %v730_v26  ;;  %759 = vmatprep.subr.bf16.mxu1 %v758_v29 }
  0x7f   : > { %733 = vmatpush3.bf16.msra.mxu0 %v730_v26  ;;  %761 = vmatpush3.bf16.msra.mxu1 %v758_v29 }
  0x80   : > { %735 = vmatprep.subr.bf16.mxu0 %v734_v32  ;;  %763 = vmatprep.subr.bf16.mxu1 %v762_v35 }
  0x83   : > { %737 = vmatpush3.bf16.msra.mxu0 %v734_v32  ;;  %765 = vmatpush3.bf16.msra.mxu1 %v762_v35 }
  0x84   : > { %739 = vmatprep.subr.bf16.mxu0 %v738_v38  ;;  %767 = vmatprep.subr.bf16.mxu1 %v766_v41 }
  0x87   : > { %741 = vmatpush3.bf16.msra.mxu0 %v738_v38  ;;  %769 = vmatpush3.bf16.msra.mxu1 %v766_v41 }
  0x88   : > { %743 = vmatprep.subr.bf16.mxu0 %v742_v44  ;;  %771 = vmatprep.subr.bf16.mxu1 %v770_v45 }
  0x8b   : > { %745 = vmatpush3.bf16.msra.mxu0 %v742_v44  ;;  %773 = vmatpush3.bf16.msra.mxu1 %v770_v45 }
  0x8c   : > { %775 = vmatprep.subr.bf16.mxu1 %v774_v49 }
  0x8e   : > { %677 = vmatmul.mubr.f32.vlgmr.msra.gmra.mrb[0].mxu0 %v275_v46 }
  0x8f   : > { %777 = vmatpush3.bf16.msra.mxu1 %v774_v49 }
 0x161   : > { %v678_v51 = vpop.f32.mrb[0].mxu0 }
 0x162   : > { %v371_v52 = vadd.f32 %v678_v51, %v599_v50  ;;  %v365_v53 = vpop.f32.mrb[1].mxu0 }
 0x163   : > { %v366_v54 = vadd.f32 %v599_v50, %v365_v53 }
 0x164   : > { %v375_v56 = vmax.f32 %v371_v52, 0.0 }
 0x165   : > { %v374_v55 = vmax.f32 %v366_v54, 0.0 }
 0x167   : > { %711 = vmatprep.mubr.f32.mxu1 %v374_v55 }
 0x168   : > { %712 = vmatmul.mubr.f32.vlgmr.msra.gmra.mrb[0].mxu1 %v375_v56 }
 0x23b   : > { %v713_v58 = vpop.f32.mrb[0].mxu1 }
 0x23c   : > { %v471_v59 = vadd.f32 %v713_v58, %v600_v57  ;;  %v465_v60 = vpop.f32.mrb[1].mxu1 }
 0x23d   : > { %v466_v61 = vadd.f32 %v600_v57, %v465_v60 }
 0x23e   : > { %v475_v62 = vadd.f32 %v471_v59, %v275_v46 }
 0x23f   : > { %v474_v63 = vadd.f32 %v466_v61, %v1235_v11 }
 0x240   : > { %v477_v0 = vmax.f32 %v475_v62, 0.0 }
 0x241   : > { %v476_v1 = vmax.f32 %v474_v63, 0.0 }
 0x242   : > { %479 = vst [vmem:[%s271_s10 + $0x8] sm:$0xff] %v477_v0 }
 0x243   : > { %478 = vst [vmem:[%s271_s10] sm:$0xff] %v476_v1 }
 0x244   : > { %948 = shalt.err (!%p945_p7)
}
 0x245   : > { %s949_s12 = scalar_lea.hbm %s1254_s11, 256  ;;  %s953_s15 = scalar_lea.hbm %s1302_s5, 768 }
 0x246   : > { %p950_p9 = scmp.ne.s32.totalorder %s1254_s11, %s949_s12  ;;  %p954_p5 = scmp.lt.u32.totalorder %s1254_s11, %s1302_s5 }
 0x247   : > { %p955_p10 = scmp.lt.u32.totalorder %s953_s15, %s949_s12  ;;  %p957_p2 = scmp.lt.u32.totalorder %s949_s12, %s1254_s11 }
 0x248   : > { %p951_p12 = pnand %p950_p9, %p1163_p6 }
 0x249   : > { %p956_p1 = por %p955_p10, %p954_p5 }
 0x24a   : > { %p952_p0 = pneg %p951_p12 }
 0x24b   : > { %p958_p4 = por %p957_p2, %p956_p1 }
 0x24d   : > { %p959_p8 = pnand %p958_p4, %p952_p0 }
 0x24f   : > { %962 = shalt.err (!%p959_p8)
}
 0x250   : > { %s1013_s13 = smov 128   ;;  %s1014_s9 = smov 8  }
 0x251   : > { %788 = dma.vmem_to_hbm [thread:$0]  (%p1163_p6), %s1248_s28, 256, %s1254_s11, %s481_s17, %s1013_s13, %s1013_s13, %s1014_s9  }
 0x252 PF: > { %p810_p11 = scmp.ge.s32.totalorder %s1005_s21, 2  ;;  %s509_s30 = sand.u32 1, %s993_s18  }
 0x253   : > { %p1317_p13 = scmp.ne.s32.totalorder %s1307_s25, 0  ;;  %s510_s7 = scalar_lea.sflag [#allocation4], %s509_s30 }
 0x255   : > { %p802_p3 = pnand %p810_p11, %p1317_p13 }
 0x257   : > { %988 = dma.done.wait (!%p802_p3), %s510_s7, 256  }
 0x258   : > { %990 = vsyncadd (!%p802_p3), %s510_s7, 4294967040  ;;  %p19_p7 = scmp.ge.s32.totalorder %s1153_s29, 5   ;;  %s1318_s18 = smov %s997_s19 }
 0x259   : > { %s1319_s19 = smov %s1001_s20  ;;  %s1320_s20 = smov %s1169_s27 }
 0x25a   : > { %s1321_s21 = smov %s1153_s29  ;;  %21 = sbr.rel (!%p19_p7) target bundleno = 6 (0x6), region = 93 }
 0x261   :  { %515 = vsyncpa [#allocation3], 1 }
 0x262   :  { %517 = vsyncpa [#allocation3 + $0x1], 1 }
 0x263   :  { %518 = vsyncpa [#allocation6], 1 }
 0x264   :  { %519 = vsyncpa [#allocation4], 1 }
 0x265   :  { %521 = vsyncpa [#allocation4 + $0x1], 1 }

</bundles_post_ra>
